<compile_context>
chip_gen: v7x
topology: tpu7x:2x2x1
jax: 0.10.0
libtpu: 0.0.40
codegen_flags: <defaults>
</compile_context>

<pallas_src>
import jax
import jax.numpy as jnp
from jax.experimental import pallas as pl
from jax.experimental.pallas import tpu as pltpu


def _round_up(v, m):
    return ((v + m - 1) // m) * m


# Raise the scoped-VMEM limit explicitly (v5e default is only 16 MiB), but size
# tiles against half of it so the same code stays safe on v7x's 64 MiB VMEM.
_VMEM_LIMIT_BYTES = 48 * 1024 * 1024
_VMEM_TILE_BUDGET = 24 * 1024 * 1024


def _maskout_kernel(lab_ref, x_ref, o_ref):
    """One batch tile: out[i, :] = x[i, label[i], :].

    Static select chain over the (compile-time) category axis: for nr_cate=3
    this is 2 VPU selects per output vreg, no one-hot temporary and no
    cross-sublane reduction. Stays in the input dtype (no gratuitous f32 cast).

    lab_ref: (TB, 1)   int32   -- category index per batch item
    x_ref:   (TB, C, F)        -- features for every category
    o_ref:   (TB, F)           -- selected features
    """
    lab = lab_ref[...]                        # (TB, 1)
    x = x_ref[...]                            # (TB, C, F)
    out = x[:, 0, :]                          # default: category 0
    for c in range(1, x.shape[1]):            # C is a compile-time constant
        out = jnp.where(lab == c, x[:, c, :], out)
    o_ref[...] = out


def _auto_batch_tile(B, C, F):
    """Largest batch tile (multiple of 8) that fits the VMEM tile budget."""
    # Per-batch-row VMEM footprint, counting the (8,128) tiling/padding of the
    # last two dims (upper bound: 4 bytes/elem) and double buffering of every
    # operand (x block + out block + label block).
    x_row = _round_up(C, 8) * _round_up(F, 128) * 4
    o_row = _round_up(F, 128) * 4
    l_row = 128 * 4
    per_row = 2 * (x_row + o_row + l_row)           # x2: double buffering
    tb_cap = max(8, (_VMEM_TILE_BUDGET // per_row) // 8 * 8)
    # Prefer >= 2 grid steps so megacore chips (v7x: 2 TCs) can shard the
    # "parallel" batch axis, without dropping below an 8-row (sublane) tile.
    tb_two_steps = _round_up(pl.cdiv(B, 2), 8)
    return min(tb_cap, max(tb_two_steps, 8))


def maskout(x, label, nr_cate=3, batch_tile=None):
    """Pallas implementation of Maskout.forward.

    x:     (B, nr_cate, nr_feat) or (B, nr_cate)
    label: integer array with B elements (any shape that flattens to (B,))
    returns: (B, nr_feat) or (B,) matching the PyTorch module.
    """
    squeeze_out = x.ndim == 2
    if squeeze_out:
        x = x[:, :, None]                     # treat nr_feat as 1
    B, C, F = x.shape
    assert C == nr_cate, "2nd dim of x should be nr_cate=%d" % nr_cate
    label = jnp.reshape(label, (B,)).astype(jnp.int32)
    # TODO(synk): PyTorch asserts label < nr_cate at runtime; here an
    # out-of-range/negative label silently selects category 0 instead of raising.

    if batch_tile is None:
        tb = _auto_batch_tile(B, C, F)
    else:
        tb = max(8, _round_up(int(batch_tile), 8))

    # Pad batch up to a tile multiple instead of asserting divisibility, so
    # callers never fall back to tiny tiles just to satisfy B % tb == 0.
    B_pad = _round_up(B, tb)
    if B_pad != B:
        x = jnp.pad(x, ((0, B_pad - B), (0, 0), (0, 0)))
        label = jnp.pad(label, (0, B_pad - B))
    lab2d = label[:, None]                    # (B_pad, 1): lives cleanly in VMEM

    # TODO(synk): for nr_feat << 128 and very large B, a (nr_cate, nr_feat, B)
    # layout with batch on the lane axis would make loads/stores lane-dense;
    # skipped here because the wrapper-side transpose costs a full extra HBM
    # pass for this standalone op.
    out = pl.pallas_call(
        _maskout_kernel,
        out_shape=jax.ShapeDtypeStruct((B_pad, F), x.dtype),
        grid_spec=pltpu.PrefetchScalarGridSpec(
            num_scalar_prefetch=0,
            grid=(B_pad // tb,),
            in_specs=[
                pl.BlockSpec((tb, 1), lambda b: (b, 0)),        # labels
                pl.BlockSpec((tb, C, F), lambda b: (b, 0, 0)),  # x
            ],
            out_specs=pl.BlockSpec((tb, F), lambda b: (b, 0)),
        ),
        compiler_params=pltpu.CompilerParams(
            dimension_semantics=("parallel",),
            vmem_limit_bytes=_VMEM_LIMIT_BYTES,
        ),
    )(lab2d, x)

    out = out[:B]
    if squeeze_out:
        out = out[:, 0]
    return out


if __name__ == "__main__":
    key = jax.random.PRNGKey(0)
    kx, kl = jax.random.split(key)

    batch, nr_cate, nr_feat = 16, 3, 32
    x = jax.random.normal(kx, (batch, nr_cate, nr_feat), dtype=jnp.float32)
    label = jax.random.randint(kl, (batch,), 0, nr_cate, dtype=jnp.int32)

    out = jax.block_until_ready(maskout(x, label, nr_cate=nr_cate))
    ref = jnp.take_along_axis(x, label[:, None, None], axis=1)[:, 0, :]
    assert out.shape == (batch, nr_feat)
    assert jnp.array_equal(out, ref), "mismatch vs reference gather (3-D path)"

    # 2-D input path: (B, nr_cate) -> (B,)
    x2 = jax.random.normal(kx, (batch, nr_cate), dtype=jnp.float32)
    out2 = jax.block_until_ready(maskout(x2, label, nr_cate=nr_cate))
    ref2 = jnp.take_along_axis(x2, label[:, None], axis=1)[:, 0]
    assert out2.shape == (batch,)
    assert jnp.array_equal(out2, ref2), "mismatch vs reference gather (2-D path)"

    # Non-divisible batch exercises the padding path (no tiny-tile fallback).
    b3 = 13
    x3 = jax.random.normal(kx, (b3, nr_cate, nr_feat), dtype=jnp.float32)
    l3 = jax.random.randint(kl, (b3,), 0, nr_cate, dtype=jnp.int32)
    out3 = jax.block_until_ready(maskout(x3, l3, nr_cate=nr_cate))
    ref3 = jnp.take_along_axis(x3, l3[:, None, None], axis=1)[:, 0, :]
    assert out3.shape == (b3, nr_feat)
    assert jnp.array_equal(out3, ref3), "mismatch vs reference gather (padded path)"

    print("KERNEL_OK")
</pallas_src>

<mosaic_0001>
module attributes {stable_mosaic.version = 11 : i64} {
  func.func @_maskout_kernel(%arg0: i32, %arg1: memref<8x1xi32, #tpu.memory_space<vmem>>, %arg2: memref<8x3x32xf32, #tpu.memory_space<vmem>>, %arg3: memref<8x32xf32, #tpu.memory_space<vmem>>) attributes {dimension_semantics = [#tpu.dimension_semantics<parallel>], iteration_bounds = array<i64: 2>, scalar_prefetch = 0 : i64, scratch_operands = 0 : i64, tpu.core_type = #tpu.core_type<tc>, window_params = [{transform_indices = @transform_0, window_bounds = array<i64: 8, 1>}, {transform_indices = @transform_1, window_bounds = array<i64: 8, 3, 32>}, {transform_indices = @transform_2, window_bounds = array<i64: 8, 32>}]} {
    %c0 = arith.constant 0 : index
    %c0_0 = arith.constant 0 : index
    %0 = vector.load %arg1[%c0, %c0_0] : memref<8x1xi32, #tpu.memory_space<vmem>>, vector<8x1xi32>
    %c0_1 = arith.constant 0 : index
    %c0_2 = arith.constant 0 : index
    %c0_3 = arith.constant 0 : index
    %1 = vector.load %arg2[%c0_1, %c0_2, %c0_3] : memref<8x3x32xf32, #tpu.memory_space<vmem>>, vector<8x3x32xf32>
    %2 = vector.extract_strided_slice %1 {offsets = [0, 0, 0], sizes = [8, 1, 32], strides = [1, 1, 1]} : vector<8x3x32xf32> to vector<8x1x32xf32>
    %3 = vector.shape_cast %2 : vector<8x1x32xf32> to vector<8x32xf32>
    %c1_i32 = arith.constant 1 : i32
    %4 = vector.broadcast %c1_i32 : i32 to vector<8x1xi32>
    %5 = arith.cmpi eq, %0, %4 : vector<8x1xi32>
    %6 = vector.extract_strided_slice %1 {offsets = [0, 1, 0], sizes = [8, 1, 32], strides = [1, 1, 1]} : vector<8x3x32xf32> to vector<8x1x32xf32>
    %7 = vector.shape_cast %6 : vector<8x1x32xf32> to vector<8x32xf32>
    %8 = vector.shape_cast %5 : vector<8x1xi1> to vector<8x1xi1>
    %9 = vector.broadcast %8 : vector<8x1xi1> to vector<8x32xi1>
    %10 = arith.select %9, %7, %3 : vector<8x32xi1>, vector<8x32xf32>
    %c2_i32 = arith.constant 2 : i32
    %11 = vector.broadcast %c2_i32 : i32 to vector<8x1xi32>
    %12 = arith.cmpi eq, %0, %11 : vector<8x1xi32>
    %13 = vector.extract_strided_slice %1 {offsets = [0, 2, 0], sizes = [8, 1, 32], strides = [1, 1, 1]} : vector<8x3x32xf32> to vector<8x1x32xf32>
    %14 = vector.shape_cast %13 : vector<8x1x32xf32> to vector<8x32xf32>
    %15 = vector.shape_cast %12 : vector<8x1xi1> to vector<8x1xi1>
    %16 = vector.broadcast %15 : vector<8x1xi1> to vector<8x32xi1>
    %17 = arith.select %16, %14, %10 : vector<8x32xi1>, vector<8x32xf32>
    %c0_4 = arith.constant 0 : index
    %c0_5 = arith.constant 0 : index
    %18 = vector.load %arg3[%c0_4, %c0_5] : memref<8x32xf32, #tpu.memory_space<vmem>>, vector<8x32xf32>
    tpu.vector_store %arg3[%c0_4, %c0_5], %17 {strides = array<i32>} : memref<8x32xf32, #tpu.memory_space<vmem>>, vector<8x32xf32>,
    return
  }
  func.func @transform_0(%arg0: i32) -> (i32, i32) {
    %c0_i32 = arith.constant 0 : i32
    %c0_i32_0 = arith.constant 0 : i32
    return %arg0, %c0_i32 : i32, i32
  }
  func.func @transform_1(%arg0: i32) -> (i32, i32, i32) {
    %c0_i32 = arith.constant 0 : i32
    %c0_i32_0 = arith.constant 0 : i32
    %c0_i32_1 = arith.constant 0 : i32
    return %arg0, %c0_i32, %c0_i32_0 : i32, i32, i32
  }
  func.func @transform_2(%arg0: i32) -> (i32, i32) {
    %c0_i32 = arith.constant 0 : i32
    %c0_i32_0 = arith.constant 0 : i32
    return %arg0, %c0_i32 : i32, i32
  }
}

</mosaic_0001>

<bundles_post_ra>
// kernel: tpu_custom_call.1
= control target key start
LH: loop header
LB: loop body
LE: loop exit
PB: predicated region body
PF: predicated region fallthrough
CT: control target
= control target key end

     0   :  { %7 = vsyncpa [#allocation3], 0  ;;  %s583_s0 = inlined_call_operand.vmem [shape: s32[16,1], index: 0, kind: input, shape index: {}]   ;;  %s584_s1 = inlined_call_operand.vmem [shape: f32[16,3,32], index: 1, kind: input, shape index: {}]   ;;  %s585_s2 = inlined_call_operand.hbm [shape: f32[16,32], index: 2, kind: output, shape index: {}]  }
   0x1   :  { %9 = vsyncpa [#allocation3 + $0x1], 0  ;;  %s465_s9 = smov 0   ;;  %s467_s10 = smov 0  }
   0x2   :  { %s469_s11 = smov 0   ;;  %s471_s12 = smov 0  }
   0x3 LB: > { %s486_s13 = sadd.s32 4294967295, %s446_s12   ;;  %s331_s14 = sadd.s32 4294967294, %s446_s12   ;;  %s446_s12 = sphi %s471_s12, %s591_s12   ;;  %s442_s11 = sphi %s469_s11, %s590_s11   ;;  %s438_s10 = sphi %s467_s10, %s589_s10   ;;  %s434_s9 = sphi %s465_s9, %s588_s9  }
   0x4   : > { %s490_s15 = sadd.s32 1, %s446_s12   ;;  %s74_s16 = sadd.s32 1, %s442_s11 }
   0x5   : > { %s71_s17 = ssub.s32 %s446_s12, %s490_s15  ;;  %p84_p0 = scmp.ne.s32.totalorder %s442_s11, %s438_s10 }
   0x6   : > { %p72_p1 = scmp.eq.s32.totalorder %s71_s17, 0  ;;  %p85_p2 = scmp.eq.s32.totalorder %s486_s13, 1 }
   0x7   : > { %p90_p3 = scmp.ne.s32.totalorder %s438_s10, %s434_s9  ;;  %p91_p4 = scmp.eq.s32.totalorder %s331_s14, 1 }
   0x8   : > { %s501_s18 = scalar_select %p72_p1, %s442_s11, %s74_s16  }
   0x9   : > { %p503_p5 = por %p85_p2, %p84_p0  ;;  %p507_p6 = por %p91_p4, %p90_p3 }
   0xa   : > { %p334_p7 = scmp.ge.s32.totalorder %s446_s12, 1  ;;  %p125_p8 = scmp.lt.s32.totalorder %s446_s12, 3 }
   0xc   : > { %p126_p9 = pnand %p334_p7, %p125_p8 }
   0xd   : > { %p151_p10 = scmp.lt.s32.totalorder (!%p126_p9), %s486_s13, 1  ;;  %v448_v0 = vmov (!%p126_p9), 0   ;;  %s337_s26 = sshll.u32 (!%p126_p9), %s486_s13, 3  ;;  %vm185_vm2 = vcmask (!%p126_p9), 1041409   ;;  %vm188_vm3 = vcmask (!%p126_p9), 1042434   ;;  %vm191_vm4 = vcmask (!%p126_p9), 1043459  }
   0xe   : > { %129 = sbr.rel (%p126_p9) target bundleno = 176 (0xb0), region = 28  ;;  %383 = vset.pattern.permute.xlu0 (!%p126_p9), %v448_v0  ;;  %p156_p11 = scmp.lt.s32.totalorder (!%p126_p9), %s337_s26, 15  ;;  %vm194_vm5 = vcmask (!%p126_p9), 1044484   ;;  %vm197_vm6 = vcmask (!%p126_p9), 1045509   ;;  %vm200_vm7 = vcmask (!%p126_p9), 1046534   ;;  %vm203_vm8 = vcmask (!%p126_p9), 1047559  }
   0xf   : > { %s148_s3 = sand.u32 (!%p126_p9), 1, %s438_s10   ;;  %s340_s5 = sshll.u32 (!%p126_p9), %s486_s13, 7  ;;  %vm244_vm10 = vcmask (!%p126_p9), 261120  }
  0x10   : > { %s335_s4 = sshll.u32 (!%p126_p9), %s148_s3, 3  ;;  %s539_s16 = scalar_lea.hbm (!%p126_p9), %s585_s2, %s340_s5 }
  0x11   : > { %s150_s6 = scalar_lea.vmem (!%p126_p9), [#allocation2], %s335_s4 }
  0x12   : > { %s260_s7 = sshll.u32 (!%p126_p9), %s150_s6, 4  ;;  %s541_s7 = int_to_ptr.vmem [resolvable:$true] %s260_s7 }
  0x13   : > { %s384_s17 = scalar_lea.vmem (!%p126_p9), %s541_s7, 128 }
  0x14   : > { %p385_p12 = scmp.ne.s32.totalorder (!%p126_p9), %s541_s7, %s384_s17 }
  0x15   : > { %s152_s21 = scalar_select %p151_p10, %s486_s13, 1 }
  0x16   : > { %s593_s26 = smov (!%p156_p11, %s337_s26), 15  ;;  %s247_s13 = scalar_lea.sflag [#allocation3], %s148_s3 }
  0x17   : > { %s336_s22 = sshll.u32 %s152_s21, 3  ;;  %s338_s27 = sshll.u32 %s593_s26, 2 }
  0x18   : > { %s154_s25 = scalar_lea.vmem %s583_s0, %s336_s22  ;;  %s522_s30 = scalar_lea.vmem %s584_s1, %s338_s27 }
  0x19   : > { %v161_v1 = vld [vmem:[%s154_s25] sm:$0xff]  ;;  %v164_v6 = vld [vmem:[%s522_s30 + $0x8] sm:$0x7]  ;;  %v165_v11 = vld [vmem:[%s522_s30 + $0xc] sm:$0x7]  ;;  %p386_p13 = pnand %p385_p12, %p503_p5  ;;  %s449_s21 = smov [#allocation2]  }
  0x1a   : > { %vm170_vm0 = vcmp.eq.s32.totalorder %v161_v1, 1  ;;  %vm222_vm1 = vcmp.eq.s32.totalorder %v161_v1, 2  ;;  %v162_v4 = vld [vmem:[%s522_s30] sm:$0x7]  ;;  %v163_v5 = vld [vmem:[%s522_s30 + $0x4] sm:$0x7] }
  0x1b   : > { %v171_v2 = vsel %vm170_vm0, 1, %v448_v0  ;;  %v223_v3 = vsel %vm222_vm1, 1, %v448_v0  ;;  %v184_v7 = vrot.slane %v162_v4, 1  ;;  %v206_v8 = vrot.slane %v163_v5, 7  ;;  %v166_v17 = vld [vmem:[%s522_s30 + $0x10] sm:$0x7]  ;;  %p387_p0 = pneg %p386_p13 }
  0x1c   : > { %173 = vperm.xlu0 %383, %v171_v2   ;;  %v228_v9 = vrot.slane %v162_v4, 2  ;;  %v229_v10 = vrot.slane %v163_v5, 1  ;;  %v187_v12 = vrot.slane %v164_v6, 7  ;;  %v208_v13 = vrot.slane %v164_v6, 6  ;;  %v167_v24 = vld [vmem:[%s522_s30 + $0x14] sm:$0x7] }
  0x1d   : > { %v186_v14 = vsel %vm185_vm2, %v163_v5, %v184_v7  ;;  %v207_v15 = vsel %vm185_vm2, %v206_v8, %v162_v4  ;;  %v190_v18 = vrot.slane %v165_v11, 6  ;;  %v210_v19 = vrot.slane %v165_v11, 5  ;;  %v168_v31 = vld [vmem:[%s522_s30 + $0x18] sm:$0x7]  ;;  %v169_v38 = vld [vmem:[%s522_s30 + $0x1c] sm:$0x7] }
  0x1e   : > { %v230_v16 = vsel %vm185_vm2, %v229_v10, %v228_v9  ;;  %v189_v20 = vsel %vm188_vm3, %v187_v12, %v186_v14  ;;  %v209_v21 = vsel %vm188_vm3, %v208_v13, %v207_v15  ;;  %v232_v22 = vrot.slane %v165_v11, 7  ;;  %s388_s22 = sshll.u32 %s449_s21, 4  ;;  %s389_s22 = int_to_ptr.vmem [resolvable:$false] %s388_s22 }
  0x1f   : > { %v231_v23 = vsel %vm188_vm3, %v164_v6, %v230_v16  ;;  %v193_v25 = vrot.slane %v166_v17, 5  ;;  %v212_v26 = vrot.slane %v166_v17, 4  ;;  %v192_v27 = vsel %vm191_vm4, %v190_v18, %v189_v20  ;;  %s390_s23 = scalar_lea.vmem %s389_s22, 256  ;;  %p391_p1 = scmp.lt.s32.totalorder %s541_s7, %s389_s22 }
  0x20   : > { %225 = vperm.xlu0 %383, %v223_v3   ;;  %v211_v28 = vsel %vm191_vm4, %v210_v19, %v209_v21  ;;  %v234_v29 = vrot.slane %v166_v17, 6  ;;  %v233_v30 = vsel %vm191_vm4, %v232_v22, %v231_v23  ;;  %v196_v32 = vrot.slane %v167_v24, 4  ;;  %p392_p2 = scmp.lt.s32.totalorder %s390_s23, %s384_s17 }
  0x21   : > { %v214_v33 = vrot.slane %v167_v24, 3  ;;  %v195_v34 = vsel %vm194_vm5, %v193_v25, %v192_v27  ;;  %v213_v35 = vsel %vm194_vm5, %v212_v26, %v211_v28  ;;  %v236_v36 = vrot.slane %v167_v24, 5 }
  0x22   : > { %v235_v37 = vsel %vm194_vm5, %v234_v29, %v233_v30  ;;  %v199_v39 = vrot.slane %v168_v31, 3  ;;  %v216_v40 = vrot.slane %v168_v31, 2  ;;  %v198_v41 = vsel %vm197_vm6, %v196_v32, %v195_v34  ;;  %p393_p3 = por %p392_p2, %p391_p1 }
  0x23   : > { %v215_v42 = vsel %vm197_vm6, %v214_v33, %v213_v35  ;;  %v238_v43 = vrot.slane %v168_v31, 4  ;;  %v237_v44 = vsel %vm197_vm6, %v236_v36, %v235_v37  ;;  %v202_v45 = vrot.slane %v169_v38, 2 }
  0x24   : > { %v218_v46 = vrot.slane %v169_v38, 1  ;;  %v201_v47 = vsel %vm200_vm7, %v199_v39, %v198_v41  ;;  %v217_v48 = vsel %vm200_vm7, %v216_v40, %v215_v42  ;;  %v240_v49 = vrot.slane %v169_v38, 3  ;;  %p394_p4 = pnand %p393_p3, %p387_p0 }
  0x25   : > { %v239_v51 = vsel %vm200_vm7, %v238_v43, %v237_v44  ;;  %v204_v52 = vsel %vm203_vm8, %v202_v45, %v201_v47 }
  0x26   : > { %v219_v53 = vsel %vm203_vm8, %v218_v46, %v217_v48  ;;  %v241_v54 = vsel %vm203_vm8, %v240_v49, %v239_v51 }
  0x9b   : > { %v174_v50 = vpop.permute.xlu0 %173 }
  0x9c   : > { %vm175_vm9 = vcmp.eq.s32.totalorder %v174_v50, 1 }
  0x9d   : > { %v221_v56 = vsel %vm175_vm9, %v204_v52, %v219_v53 }
  0x9f   : > { %v226_v55 = vpop.permute.xlu0 %225 }
  0xa0   : > { %vm227_vm11 = vcmp.eq.s32.totalorder %v226_v55, 1 }
  0xa1   : > { %v243_v57 = vsel %vm227_vm11, %v241_v54, %v221_v56 }
  0xa2   : > { %245 = vst.msk [vmem:[%s150_s6] sm:$0xff] %vm244_vm10, %v243_v57 }
  0xa3   : > { %397 = shalt.err (!%p394_p4)
}
  0xa4   : > { %s398_s24 = scalar_lea.hbm %s539_s16, 128  ;;  %s402_s27 = scalar_lea.hbm %s585_s2, 256 }
  0xa5   : > { %p399_p7 = scmp.ne.s32.totalorder %s539_s16, %s398_s24  ;;  %p403_p10 = scmp.lt.u32.totalorder %s539_s16, %s585_s2 }
  0xa6   : > { %p404_p11 = scmp.lt.u32.totalorder %s402_s27, %s398_s24  ;;  %p406_p13 = scmp.lt.u32.totalorder %s398_s24, %s539_s16 }
  0xa7   : > { %p400_p8 = pnand %p399_p7, %p503_p5 }
  0xa8   : > { %p405_p12 = por %p404_p11, %p403_p10 }
  0xa9   : > { %p401_p9 = pneg %p400_p8 }
  0xaa   : > { %p407_p0 = por %p406_p13, %p405_p12 }
  0xac   : > { %p408_p1 = pnand %p407_p0, %p401_p9 }
  0xae   : > { %411 = shalt.err (!%p408_p1)
}
  0xaf   : > { %343 = dma.vmem_to_hbm [thread:$0]  (%p503_p5), %s541_s7, 128, %s539_s16, %s247_s13  }
  0xb0 PF: > { %p349_p2 = scmp.ge.s32.totalorder %s446_s12, 2  ;;  %s272_s30 = sand.u32 1, %s434_s9  }
  0xb1   : > { %s273_s3 = scalar_lea.sflag [#allocation3], %s272_s30 }
  0xb2   : > { %p346_p3 = pnand %p349_p2, %p507_p6 }
  0xb4   : > { %429 = dma.done.wait (!%p346_p3), %s273_s3, 128  }
  0xb5   : > { %431 = vsyncadd (!%p346_p3), %s273_s3, 4294967168  ;;  %p12_p4 = scmp.ge.s32.totalorder %s490_s15, 4   ;;  %s588_s9 = smov %s438_s10 }
  0xb6   : > { %s589_s10 = smov %s442_s11  ;;  %s590_s11 = smov %s501_s18 }
  0xb7   : > { %s591_s12 = smov %s490_s15  ;;  %14 = sbr.rel (!%p12_p4) target bundleno = 3 (0x3), region = 66 }
  0xbe   :  { %278 = vsyncpa [#allocation3], 1 }
  0xbf   :  { %280 = vsyncpa [#allocation3 + $0x1], 1 }

</bundles_post_ra>
